<compile_context>
chip_gen: v7x
topology: tpu7x:2x2x1
jax: 0.10.0
libtpu: 0.0.40
codegen_flags: <defaults>
</compile_context>

<pallas_src>
import jax
import jax.numpy as jnp
from jax import lax
from jax.experimental import pallas as pl
from jax.experimental.pallas import tpu as pltpu


def _encoder_kernel(x_ref, wconv_ref, wfh_ref, bhead_ref, out_ref):
    """One grid step = one group of G whole frames (fully independent).

    x_ref    : (G, H+2, KP)    zero-padded frames, lanes = (W+2)*C (+pad), bf16
    wconv_ref: (3, KP, W*CM)   per-ky fused depthwise*pointwise conv weight,
                               block-structured over output column w, bf16
    wfh_ref  : (W*CM, D)       GAP w-fold (1/(H*W)) x (backbone fc @ head W), bf16
    bhead_ref: (1, D)          folded bias, f32
    out_ref  : (G, D)          sigmoid(relu(.)), f32
    """
    G, hp2, kp = x_ref.shape
    H = hp2 - 2
    GH = G * H
    WCM = wconv_ref.shape[2]

    xin = x_ref[...]                                      # (G, H+2, KP) bf16

    # 3x3 depthwise + 1x1 pointwise conv as 3 MXU matmuls (one per ky tap).
    # im2col happens here via static slices; kx shifts live in wconv's blocks.
    acc = jnp.dot(xin[:, 0:H, :].reshape(GH, kp), wconv_ref[0],
                  preferred_element_type=jnp.float32)     # (G*H, W*CM) f32
    for ky in (1, 2):
        tap = xin[:, ky:ky + H, :].reshape(GH, kp)
        acc = acc + jnp.dot(tap, wconv_ref[ky],
                            preferred_element_type=jnp.float32)
    y = jnp.maximum(acc, 0.0).astype(jnp.bfloat16)        # (G*H, W*CM)

    # Per-frame sum over h: block-diagonal mask generated in-kernel (never
    # DMA'd), bf16 operands with f32 accumulation on the MXU.
    row = lax.broadcasted_iota(jnp.int32, (G, GH), 0)
    col = lax.broadcasted_iota(jnp.int32, (G, GH), 1)
    lo = row * H
    pool = jnp.where((col >= lo) & (col < lo + H), 1.0, 0.0).astype(jnp.bfloat16)
    sum_h = jnp.dot(pool, y, preferred_element_type=jnp.float32)   # (G, W*CM)

    # GAP fold over w + frozen backbone fc + head Linear, folded into one matmul.
    z = jnp.dot(sum_h.astype(jnp.bfloat16), wfh_ref[...],
                preferred_element_type=jnp.float32) + bhead_ref[...]   # (G, D)
    z = jnp.maximum(z, 0.0)                               # ReLU (f32, v5e-safe)
    out_ref[...] = jax.nn.sigmoid(z)                      # Sigmoid


@jax.jit
def encoder_cnn_forward(x_3d, params):
    """x_3d: (B, T, C, H, W) float32 (PyTorch NCHW frames).  Returns (B, T, D)."""
    B, T, C, H, W = x_3d.shape
    dw, pw, fcw, fcb, hw, hb = (params[k] for k in
                                ("dw", "pw", "fcw", "fcb", "hw", "hb"))
    CM = pw.shape[1]
    D = hw.shape[1]
    TB = T * B
    WC = (W + 2) * C
    KP = ((WC + 7) // 8) * 8            # pad contraction dim (zeros: exact)
    WCM = W * CM
    G = 8 if TB % 8 == 0 else TB        # frames per grid step

    # ---- frames: NCHW -> time-major, zero-pad spatial, merge (W+2, C) into lanes
    x = jnp.transpose(x_3d, (1, 0, 3, 4, 2))                          # (T,B,H,W,C)
    xp = jnp.pad(x, ((0, 0), (0, 0), (1, 1), (1, 1), (0, 0)))         # (T,B,H+2,W+2,C)
    xp = xp.reshape(TB, H + 2, WC)
    xp = jnp.pad(xp, ((0, 0), (0, 0), (0, KP - WC))).astype(jnp.bfloat16)

    # ---- fused conv weight (exact):
    # wconv[ky, w'*C + c, w*CM + m] = dw[3*ky + (w'-w), c] * pw[c, m]  if 0<=w'-w<=2
    fused = dw.reshape(3, 3, C)[:, :, :, None] * pw[None, None, :, :]  # (3,3,C,CM)
    kx = jnp.arange(W + 2)[:, None] - jnp.arange(W)[None, :]           # (W+2, W)
    valid = (kx >= 0) & (kx <= 2)
    big = fused[:, jnp.clip(kx, 0, 2), :, :]                           # (3,W+2,W,C,CM)
    big = jnp.where(valid[None, :, :, None, None], big, 0.0)
    wconv = jnp.transpose(big, (0, 1, 3, 2, 4)).reshape(3, WC, WCM)
    wconv = jnp.pad(wconv, ((0, 0), (0, KP - WC), (0, 0))).astype(jnp.bfloat16)

    # ---- folded GAP w-fold + backbone fc + head Linear (exact algebraic folds)
    whead = fcw @ hw                                                   # (CM, D)
    wfh = (jnp.tile(whead, (W, 1)) / (H * W)).astype(jnp.bfloat16)     # (W*CM, D)
    bhead = (fcb @ hw + hb).astype(jnp.float32)                        # (1, D)

    out_tb = pl.pallas_call(
        _encoder_kernel,
        out_shape=jax.ShapeDtypeStruct((TB, D), jnp.float32),
        grid=(TB // G,),
        in_specs=[
            pl.BlockSpec((G, H + 2, KP), lambda i: (i, 0, 0)),
            pl.BlockSpec((3, KP, WCM), lambda i: (0, 0, 0)),
            pl.BlockSpec((WCM, D), lambda i: (0, 0)),
            pl.BlockSpec((1, D), lambda i: (0, 0)),
        ],
        out_specs=pl.BlockSpec((G, D), lambda i: (i, 0)),
        compiler_params=pltpu.CompilerParams(
            dimension_semantics=("parallel",)),
    )(xp, wconv, wfh, bhead)

    # (T*B, D) -> (T, B, D) -> (B, T, D)  == torch.stack(dim=0).transpose_(0, 1)
    return jnp.transpose(out_tb.reshape(T, B, D), (1, 0, 2))


def _reference(x_3d, params):
    """Pure-JAX reference of the same (proxy-backbone) math, unfused, f32."""
    B, T, C, H, W = x_3d.shape
    dw, pw, fcw, fcb, hw, hb = (params[k] for k in
                                ("dw", "pw", "fcw", "fcb", "hw", "hb"))
    x = jnp.transpose(x_3d, (1, 0, 3, 4, 2))
    xp = jnp.pad(x, ((0, 0), (0, 0), (1, 1), (1, 1), (0, 0)))
    acc = jnp.zeros((T, B, H, W, C), jnp.float32)
    k = 0
    for ky in range(3):
        for kx in range(3):
            acc = acc + xp[:, :, ky:ky + H, kx:kx + W, :] * dw[k, :]
            k += 1
    y = jnp.maximum(jnp.einsum("tbhwc,cm->tbhwm", acc, pw), 0.0)
    g = jnp.mean(y, axis=(2, 3))                                   # (T, B, CM)
    feat = g @ fcw + fcb                                           # (T, B, 1000)
    z = jnp.maximum(feat @ hw + hb, 0.0)
    return jnp.transpose(jax.nn.sigmoid(z), (1, 0, 2))             # (B, T, D)


def init_params(key, C, CM, encoder_output_dim):
    """Deterministic synthetic parameters (shapes implied by the module)."""
    ks = jax.random.split(key, 6)
    dw = 0.1 * jax.random.normal(ks[0], (9, C), jnp.float32)          # depthwise 3x3
    pw = 0.1 * jax.random.normal(ks[1], (C, CM), jnp.float32)         # pointwise 1x1
    fcw = 0.05 * jax.random.normal(ks[2], (CM, 1000), jnp.float32)    # backbone fc
    fcb = 0.01 * jax.random.normal(ks[3], (1, 1000), jnp.float32)
    hw = 0.05 * jax.random.normal(ks[4], (1000, encoder_output_dim),  # nn.Linear(1000, D)
                                  jnp.float32)                        # stored as (in, out)
    hb = 0.01 * jax.random.normal(ks[5], (1, encoder_output_dim), jnp.float32)
    return dict(dw=dw, pw=pw, fcw=fcw, fcb=fcb, hw=hw, hb=hb)


if __name__ == "__main__":
    B, T, C, H, W = 2, 8, 3, 16, 16
    CM = 32                      # proxy-backbone hidden channels
    encoder_output_dim = 32

    key = jax.random.PRNGKey(0)
    k_x, k_p = jax.random.split(key)
    x_3d = jax.random.normal(k_x, (B, T, C, H, W), jnp.float32)
    params = init_params(k_p, C, CM, encoder_output_dim)

    out = encoder_cnn_forward(x_3d, params)
    out = jax.block_until_ready(out)

    assert out.shape == (B, T, encoder_output_dim), out.shape
    assert bool(jnp.all(out >= 0.5)) and bool(jnp.all(out <= 1.0))  # sigmoid(relu(.)) range

    ref = _reference(x_3d, params)
    assert bool(jnp.allclose(out, ref, atol=1e-2, rtol=1e-2)), \
        float(jnp.max(jnp.abs(out - ref)))
    print("KERNEL_OK")
</pallas_src>

<mosaic_0001>
module attributes {stable_mosaic.version = 11 : i64} {
  func.func @_encoder_kernel(%arg0: i32, %arg1: memref<8x18x56xbf16, #tpu.memory_space<vmem>>, %arg2: memref<3x56x512xbf16, #tpu.memory_space<vmem>>, %arg3: memref<512x32xbf16, #tpu.memory_space<vmem>>, %arg4: memref<1x32xf32, #tpu.memory_space<vmem>>, %arg5: memref<8x32xf32, #tpu.memory_space<vmem>>) attributes {dimension_semantics = [#tpu.dimension_semantics<parallel>], iteration_bounds = array<i64: 2>, scalar_prefetch = 0 : i64, scratch_operands = 0 : i64, tpu.core_type = #tpu.core_type<tc>, window_params = [{transform_indices = @transform_0, window_bounds = array<i64: 8, 18, 56>}, {pipeline_mode = #tpu.pipeline_mode<synchronous>, transform_indices = @transform_1, window_bounds = array<i64: 3, 56, 512>}, {pipeline_mode = #tpu.pipeline_mode<synchronous>, transform_indices = @transform_2, window_bounds = array<i64: 512, 32>}, {pipeline_mode = #tpu.pipeline_mode<synchronous>, transform_indices = @transform_3, window_bounds = array<i64: 1, 32>}, {transform_indices = @transform_4, window_bounds = array<i64: 8, 32>}]} {
    %c0 = arith.constant 0 : index
    %c0_0 = arith.constant 0 : index
    %c0_1 = arith.constant 0 : index
    %0 = vector.load %arg1[%c0, %c0_0, %c0_1] : memref<8x18x56xbf16, #tpu.memory_space<vmem>>, vector<8x18x56xbf16>
    %1 = vector.extract_strided_slice %0 {offsets = [0, 0, 0], sizes = [8, 16, 56], strides = [1, 1, 1]} : vector<8x18x56xbf16> to vector<8x16x56xbf16>
    %2 = vector.shape_cast %1 : vector<8x16x56xbf16> to vector<128x56xbf16>
    %c0_2 = arith.constant 0 : index
    %c0_3 = arith.constant 0 : index
    %c0_4 = arith.constant 0 : index
    %3 = vector.load %arg2[%c0_2, %c0_3, %c0_4] : memref<3x56x512xbf16, #tpu.memory_space<vmem>>, vector<1x56x512xbf16>
    %4 = vector.shape_cast %3 : vector<1x56x512xbf16> to vector<56x512xbf16>
    %cst = arith.constant dense<0.000000e+00> : vector<128x512xf32>
    %5 = tpu.matmul %2, %4, %cst {dimension_numbers = #tpu.dot_dimension_numbers<[1], [0], [0], [1], [0, 0, 1, 1], [], []>} : vector<128x56xbf16>, vector<56x512xbf16>, vector<128x512xf32> -> vector<128x512xf32>
    %6 = vector.extract_strided_slice %0 {offsets = [0, 1, 0], sizes = [8, 16, 56], strides = [1, 1, 1]} : vector<8x18x56xbf16> to vector<8x16x56xbf16>
    %7 = vector.shape_cast %6 : vector<8x16x56xbf16> to vector<128x56xbf16>
    %c1 = arith.constant 1 : index
    %c0_5 = arith.constant 0 : index
    %c0_6 = arith.constant 0 : index
    %8 = vector.load %arg2[%c1, %c0_5, %c0_6] : memref<3x56x512xbf16, #tpu.memory_space<vmem>>, vector<1x56x512xbf16>
    %9 = vector.shape_cast %8 : vector<1x56x512xbf16> to vector<56x512xbf16>
    %cst_7 = arith.constant dense<0.000000e+00> : vector<128x512xf32>
    %10 = tpu.matmul %7, %9, %cst_7 {dimension_numbers = #tpu.dot_dimension_numbers<[1], [0], [0], [1], [0, 0, 1, 1], [], []>} : vector<128x56xbf16>, vector<56x512xbf16>, vector<128x512xf32> -> vector<128x512xf32>
    %11 = arith.addf %5, %10 : vector<128x512xf32>
    %12 = vector.extract_strided_slice %0 {offsets = [0, 2, 0], sizes = [8, 16, 56], strides = [1, 1, 1]} : vector<8x18x56xbf16> to vector<8x16x56xbf16>
    %13 = vector.shape_cast %12 : vector<8x16x56xbf16> to vector<128x56xbf16>
    %c2 = arith.constant 2 : index
    %c0_8 = arith.constant 0 : index
    %c0_9 = arith.constant 0 : index
    %14 = vector.load %arg2[%c2, %c0_8, %c0_9] : memref<3x56x512xbf16, #tpu.memory_space<vmem>>, vector<1x56x512xbf16>
    %15 = vector.shape_cast %14 : vector<1x56x512xbf16> to vector<56x512xbf16>
    %cst_10 = arith.constant dense<0.000000e+00> : vector<128x512xf32>
    %16 = tpu.matmul %13, %15, %cst_10 {dimension_numbers = #tpu.dot_dimension_numbers<[1], [0], [0], [1], [0, 0, 1, 1], [], []>} : vector<128x56xbf16>, vector<56x512xbf16>, vector<128x512xf32> -> vector<128x512xf32>
    %17 = arith.addf %11, %16 : vector<128x512xf32>
    %cst_11 = arith.constant 0.000000e+00 : f32
    %18 = vector.broadcast %cst_11 : f32 to vector<128x512xf32>
    %19 = arith.maximumf %17, %18 : vector<128x512xf32>
    %20 = arith.truncf %19 : vector<128x512xf32> to vector<128x512xbf16>
    %21 = tpu.iota {dimensions = array<i32: 0>} : vector<8x128xi32>
    %22 = tpu.iota {dimensions = array<i32: 1>} : vector<8x128xi32>
    %c16_i32 = arith.constant 16 : i32
    %23 = vector.broadcast %c16_i32 : i32 to vector<8x128xi32>
    %24 = arith.muli %21, %23 : vector<8x128xi32>
    %25 = arith.cmpi sge, %22, %24 : vector<8x128xi32>
    %c16_i32_12 = arith.constant 16 : i32
    %26 = vector.broadcast %c16_i32_12 : i32 to vector<8x128xi32>
    %27 = arith.addi %24, %26 : vector<8x128xi32>
    %28 = arith.cmpi slt, %22, %27 : vector<8x128xi32>
    %29 = arith.andi %25, %28 : vector<8x128xi1>
    %cst_13 = arith.constant 1.000000e+00 : f32
    %cst_14 = arith.constant 0.000000e+00 : f32
    %30 = vector.broadcast %cst_13 : f32 to vector<8x128xf32>
    %31 = vector.broadcast %cst_14 : f32 to vector<8x128xf32>
    %32 = arith.select %29, %30, %31 : vector<8x128xi1>, vector<8x128xf32>
    %33 = arith.truncf %32 : vector<8x128xf32> to vector<8x128xbf16>
    %cst_15 = arith.constant dense<0.000000e+00> : vector<8x512xf32>
    %34 = tpu.matmul %33, %20, %cst_15 {dimension_numbers = #tpu.dot_dimension_numbers<[1], [0], [0], [1], [0, 0, 1, 1], [], []>} : vector<8x128xbf16>, vector<128x512xbf16>, vector<8x512xf32> -> vector<8x512xf32>
    %35 = arith.truncf %34 : vector<8x512xf32> to vector<8x512xbf16>
    %c0_16 = arith.constant 0 : index
    %c0_17 = arith.constant 0 : index
    %36 = vector.load %arg3[%c0_16, %c0_17] : memref<512x32xbf16, #tpu.memory_space<vmem>>, vector<512x32xbf16>
    %cst_18 = arith.constant dense<0.000000e+00> : vector<8x32xf32>
    %37 = tpu.matmul %35, %36, %cst_18 {dimension_numbers = #tpu.dot_dimension_numbers<[1], [0], [0], [1], [0, 0, 1, 1], [], []>} : vector<8x512xbf16>, vector<512x32xbf16>, vector<8x32xf32> -> vector<8x32xf32>
    %c0_19 = arith.constant 0 : index
    %c0_20 = arith.constant 0 : index
    %38 = vector.load %arg4[%c0_19, %c0_20] : memref<1x32xf32, #tpu.memory_space<vmem>>, vector<1x32xf32>
    %39 = vector.broadcast %38 : vector<1x32xf32> to vector<8x32xf32>
    %40 = arith.addf %37, %39 : vector<8x32xf32>
    %cst_21 = arith.constant 0.000000e+00 : f32
    %41 = vector.broadcast %cst_21 : f32 to vector<8x32xf32>
    %42 = arith.maximumf %40, %41 : vector<8x32xf32>
    %43 = arith.negf %42 : vector<8x32xf32>
    %44 = math.exp %43 : vector<8x32xf32>
    %cst_22 = arith.constant 1.000000e+00 : f32
    %45 = vector.broadcast %cst_22 : f32 to vector<8x32xf32>
    %46 = arith.addf %45, %44 : vector<8x32xf32>
    %47 = arith.divf %45, %46 : vector<8x32xf32>
    %c0_23 = arith.constant 0 : index
    %c0_24 = arith.constant 0 : index
    %48 = vector.load %arg5[%c0_23, %c0_24] : memref<8x32xf32, #tpu.memory_space<vmem>>, vector<8x32xf32>
    tpu.vector_store %arg5[%c0_23, %c0_24], %47 {strides = array<i32>} : memref<8x32xf32, #tpu.memory_space<vmem>>, vector<8x32xf32>,
    return
  }
  func.func @transform_0(%arg0: i32) -> (i32, i32, i32) {
    %c0_i32 = arith.constant 0 : i32
    %c0_i32_0 = arith.constant 0 : i32
    %c0_i32_1 = arith.constant 0 : i32
    return %arg0, %c0_i32, %c0_i32_0 : i32, i32, i32
  }
  func.func @transform_1(%arg0: i32) -> (i32, i32, i32) {
    %c0_i32 = arith.constant 0 : i32
    %c0_i32_0 = arith.constant 0 : i32
    %c0_i32_1 = arith.constant 0 : i32
    %c0_i32_2 = arith.constant 0 : i32
    return %c0_i32, %c0_i32_0, %c0_i32_1 : i32, i32, i32
  }
  func.func @transform_2(%arg0: i32) -> (i32, i32) {
    %c0_i32 = arith.constant 0 : i32
    %c0_i32_0 = arith.constant 0 : i32
    %c0_i32_1 = arith.constant 0 : i32
    return %c0_i32, %c0_i32_0 : i32, i32
  }
  func.func @transform_3(%arg0: i32) -> (i32, i32) {
    %c0_i32 = arith.constant 0 : i32
    %c0_i32_0 = arith.constant 0 : i32
    %c0_i32_1 = arith.constant 0 : i32
    return %c0_i32, %c0_i32_0 : i32, i32
  }
  func.func @transform_4(%arg0: i32) -> (i32, i32) {
    %c0_i32 = arith.constant 0 : i32
    %c0_i32_0 = arith.constant 0 : i32
    return %arg0, %c0_i32 : i32, i32
  }
}

</mosaic_0001>

<bundles_post_ra>
// kernel: mul.8
= control target key start
LH: loop header
LB: loop body
LE: loop exit
PB: predicated region body
PF: predicated region fallthrough
CT: control target
= control target key end

     0   :  { %2 = vsyncpa [#allocation1], 0  ;;  %s79_s6 = smov [#allocation0]   ;;  %s113_s0 = inlined_call_operand.hbm [shape: f32[9,3], index: 0, kind: input, shape index: {}]   ;;  %s114_s1 = inlined_call_operand.vmem [shape: f32[3,3,3], index: 1, kind: output, shape index: {}]  }
   0x1   :  { %s7_s7 = sshll.u32 %s79_s6, 4  ;;  %s55_s10 = scalar_lea.hbm %s113_s0, 64  ;;  %s8_s7 = int_to_ptr.vmem [resolvable:$true] %s7_s7 }
   0x2   :  { %p56_p0 = scmp.ne.s32.totalorder %s113_s0, %s55_s10  ;;  %p59_p1 = scmp.lt.u32.totalorder %s55_s10, %s113_s0 }
   0x4   :  { %p61_p2 = pnand %p59_p1, %p56_p0 }
   0x6   :  { %64 = shalt.err (!%p61_p2)
}
   0x7   :  { %s65_s15 = scalar_lea.vmem %s8_s7, 64  ;;  %p70_p4 = scmp.lt.s32.totalorder %s8_s7, %s8_s7 }
   0x8   :  { %p66_p3 = scmp.ne.s32.totalorder %s8_s7, %s65_s15  ;;  %p71_p5 = scmp.lt.s32.totalorder %s65_s15, %s65_s15 }
   0xa   :  { %p72_p6 = por %p71_p5, %p70_p4 }
   0xc   :  { %p73_p7 = pnand %p72_p6, %p66_p3 }
   0xe   :  { %76 = shalt.err (!%p73_p7)
}
   0xf   :  { %10 = dma.hbm_to_vmem [thread:$0]  %s113_s0, 64, %s8_s7, [#allocation1]  }
  0x10   :  { %77 = dma.done.wait [#allocation1], 64  }
  0x11   :  { %78 = vsyncadd [#allocation1], 4294967232  ;;  %v14_v0 = vld [vmem:[#allocation0] sm:$0xf]  ;;  %vm17_vm0 = vcmask 23552   ;;  %s80_s0 = smov 125  }
  0x12   :  { %15 = vst [vmem:[#allocation3] sm:$0xf] %v14_v0  ;;  %s81_s18 = smov 122  }
  0x19   :  { %v19_v1 = vld [vmem:[#allocation3] sm:$0x7]  }
  0x1a   :  { %v16_v2 = vld [vmem:[#allocation3] sm:$0x7]   ;;  %20 = vrot.lane.b32.xlu0 %v19_v1, %s80_s0 }
  0x1b   :  { %18 = vst.msk [vmem:[#allocation2] ss:$8 sm:$0x7] %vm17_vm0, %v16_v2   ;;  %v25_v3 = vld [vmem:[#allocation3] sm:$0x7]  }
  0x1e   :  { %26 = vrot.lane.b32.xlu0 %v25_v3, %s81_s18 }
  0x8c   :  { %v21_v4 = vpop.permute.xlu0 %20  }
  0x8d   :  { %24 = vst.msk [vmem:[#allocation2 + $0x1] ss:$8 sm:$0x7] %vm17_vm0, %v21_v4  }
  0x90   :  { %v27_v5 = vpop.permute.xlu0 %26  }
  0x91   :  { %30 = vst.msk [vmem:[#allocation2 + $0x2] ss:$8 sm:$0x7] %vm17_vm0, %v27_v5  }
  0x98   :  { %v34_v6 = vld [vmem:[#allocation2] sm:$0xf]  ;;  %v38_v7 = vld [vmem:[#allocation2 + $0x8] sm:$0xf]  ;;  %v43_v8 = vld [vmem:[#allocation2 + $0x10] sm:$0xf] }
  0x99   :  { %36 = vst [vmem:[%s114_s1] sm:$0xf] %v34_v6  ;;  %50 = vst [vmem:[%s114_s1 + $0x4] sm:$0xf] %v38_v7 }
  0x9a   :  { %51 = vst [vmem:[%s114_s1 + $0x8] sm:$0xf] %v43_v8 }
  0x9b   :  { %48 = vsyncpa [#allocation1], 1 }

// kernel: encoder_cnn_forward.1
= control target key start
LH: loop header
LB: loop body
LE: loop exit
PB: predicated region body
PF: predicated region fallthrough
CT: control target
= control target key end

     0   :  { %s2818_s15 = smov 0   ;;  %s3520_s0 = inlined_call_operand.vmem [shape: bf16[16,18,56], index: 0, kind: input, shape index: {}]   ;;  %s3521_s1 = inlined_call_operand.vmem [shape: bf16[3,56,512], index: 1, kind: input, shape index: {}]   ;;  %s3522_s2 = inlined_call_operand.vmem [shape: bf16[512,32], index: 2, kind: input, shape index: {}]   ;;  %s3523_s3 = inlined_call_operand.vmem [shape: f32[1,32], index: 3, kind: input, shape index: {}]   ;;  %s3524_s4 = inlined_call_operand.vmem [shape: f32[16,32], index: 4, kind: output, shape index: {}]  }
   0x1 LB: > { %s2824_s16 = sadd.s32 4294967295, %s2789_s15   ;;  %p2284_p0 = scmp.ge.s32.totalorder %s2789_s15, 1  ;;  %s2789_s15 = sphi %s2818_s15, %s14_s15  }
   0x2   : > { %p164_p1 = scmp.lt.s32.totalorder %s2789_s15, 3 }
   0x4   : > { %p165_p2 = pnand %p2284_p0, %p164_p1 }
   0x5   : > { %v2673_v0 = vld [vmem:[%s3521_s1 + $0x74] ss:$16 sps:$4 sm:$0xff] (!%p165_p2)   ;;  %v2675_v1 = vld [vmem:[%s3521_s1 + $0x7c] ss:$16 sps:$4 sm:$0xff] (!%p165_p2)   ;;  %v2791_v2 = vmov (!%p165_p2), 0   ;;  %s2285_s21 = sshll.u32 (!%p165_p2), %s2824_s16, 3 }
   0x6   : > { %168 = sbr.rel (%p165_p2) target bundleno = 900 (0x384), region = 36  ;;  %614 = vmatprep.mubr.bf16.mxu0 (!%p165_p2), %v2791_v2  ;;  %727 = vmatprep.mubr.bf16.mxu1 (!%p165_p2), %v2791_v2  ;;  %v2677_v3 = vld [vmem:[%s3521_s1 + $0x70] ss:$16 sps:$4 sm:$0xff] (!%p165_p2)   ;;  %v2678_v4 = vld [vmem:[%s3521_s1 + $0x78] ss:$16 sps:$4 sm:$0xff] (!%p165_p2)   ;;  %p191_p3 = scmp.lt.s32.totalorder (!%p165_p2), %s2285_s21, 15 }
   0x7   : > { %582 = vmatprep.subr.bf16.mxu0 (!%p165_p2), %v2673_v0  ;;  %695 = vmatprep.subr.bf16.mxu1 (!%p165_p2), %v2675_v1  ;;  %v2679_v5 = vld [vmem:[%s3521_s1 + $0x94] ss:$16 sps:$4 sm:$0xff] (!%p165_p2)   ;;  %v2681_v6 = vld [vmem:[%s3521_s1 + $0x9c] ss:$16 sps:$4 sm:$0xff] (!%p165_p2)   ;;  %v2683_v7 = vld [vmem:[%s3521_s1 + $0x90] ss:$16 sps:$4 sm:$0xff] (!%p165_p2)  }
   0x8   : > { %583 = vmatpush1.bf16.msra.mxu0 (!%p165_p2), %v2677_v3  ;;  %696 = vmatpush1.bf16.msra.mxu1 (!%p165_p2), %v2678_v4  ;;  %v2684_v8 = vld [vmem:[%s3521_s1 + $0x98] ss:$16 sps:$4 sm:$0xff] (!%p165_p2)   ;;  %v2685_v9 = vld [vmem:[%s3521_s1 + $0xb4] ss:$16 sps:$4 sm:$0xff] (!%p165_p2)   ;;  %v2687_v10 = vld [vmem:[%s3521_s1 + $0xbc] ss:$16 sps:$4 sm:$0xff] (!%p165_p2)  }
   0x9   : > { %584 = vmatprep.subr.bf16.mxu0 (!%p165_p2), %v2679_v5  ;;  %697 = vmatprep.subr.bf16.mxu1 (!%p165_p2), %v2681_v6  ;;  %v2689_v11 = vld [vmem:[%s3521_s1 + $0xb0] ss:$16 sps:$4 sm:$0xff] (!%p165_p2)   ;;  %v2690_v12 = vld [vmem:[%s3521_s1 + $0xb8] ss:$16 sps:$4 sm:$0xff] (!%p165_p2)   ;;  %vm569_vm0 = vcmask (!%p165_p2), 1043456   ;;  %vm544_vm3 = vcmask (!%p165_p2), 457728  }
   0xa   : > { %v2300_v13 = vld [vmem:[%s3521_s1 + $0xd0] sm:$0xff] (!%p165_p2)  ;;  %v2301_v14 = vld [vmem:[%s3521_s1 + $0xd8] sm:$0xff] (!%p165_p2)  ;;  %vm240_vm1 = vsmask.f32 (!%p165_p2), 3328  ;;  %vm241_vm2 = vsmask.f32 (!%p165_p2), 7440 }
   0xb   : > { %v2323_v15 = vcombine.high (!%p165_p2), %v2300_v13, %v2300_v13  ;;  %v2325_v16 = vcombine.high (!%p165_p2), %v2301_v14, %v2301_v14  ;;  %v2322_v17 = vcombine.low (!%p165_p2), %v2300_v13, %v2300_v13  ;;  %v2324_v21 = vcombine.low (!%p165_p2), %v2301_v14, %v2301_v14  ;;  %v2697_v34 = vld [vmem:[%s3521_s1 + $0x4] ss:$16 sps:$4 sm:$0xff] (!%p165_p2)   ;;  %v2700_v37 = vld [vmem:[%s3521_s1 + $0xc] ss:$16 sps:$4 sm:$0xff] (!%p165_p2)   ;;  %vm2914_vm4 = vmor (!%p165_p2), %vm240_vm1, %vm241_vm2  ;;  %p197_p4 = scmp.lt.s32.totalorder (!%p165_p2), %s2824_s16, 1 }
   0xc   : > { %585 = vmatpush1.bf16.msra.mxu0 (!%p165_p2), %v2683_v7  ;;  %698 = vmatpush1.bf16.msra.mxu1 (!%p165_p2), %v2684_v8  ;;  %v2695_v62 = vld [vmem:[%s3521_s1] ss:$16 sps:$4 sm:$0xff] (!%p165_p2)   ;;  %v2698_v63 = vld [vmem:[%s3521_s1 + $0x8] ss:$16 sps:$4 sm:$0xff] (!%p165_p2)   ;;  %v2703_v8 = vld [vmem:[%s3521_s1 + $0x24] ss:$16 sps:$4 sm:$0xff] (!%p165_p2)  }
   0xd   : > { %s3534_s21 = smov (!%p191_p3, %s2285_s21), 15  ;;  %586 = vmatprep.subr.bf16.mxu0 %v2685_v9  ;;  %699 = vmatprep.subr.bf16.mxu1 %v2687_v10  ;;  %v571_v27 = vsel %vm569_vm0, %v2322_v17, 0  ;;  %v577_v31 = vsel %vm569_vm0, %v2324_v21, 0  ;;  %v2706_v13 = vld [vmem:[%s3521_s1 + $0x2c] ss:$16 sps:$4 sm:$0xff]   ;;  %vm1188_vm5 = vcmask 1042432  }
   0xe   : > { %s2662_s10 = smul.u32 12, %s3534_s21  ;;  %vm1189_vm6 = vcmask 1046532   ;;  %v2718_v40 = vld [vmem:[%s3521_s1 + $0xe0] ss:$16 sps:$4 sm:$0xff]   ;;  %s3536_s16 = smov (!%p197_p4, %s2824_s16), 1  ;;  %vm2225_vm12 = vcmask 261120  }
   0xf   : > { %vm3158_vm7 = vmor %vm1188_vm5, %vm1189_vm6  ;;  %s2287_s29 = sshll.u32 %s3536_s16, 3 }
  0x10   : > { %s2876_s25 = scalar_lea.vmem %s3520_s0, %s2662_s10  ;;  %587 = vmatpush1.bf16.msra.mxu0 %v2689_v11  ;;  %700 = vmatpush1.bf16.msra.mxu1 %v2690_v12  ;;  %s200_s6 = scalar_lea.vmem %s3524_s4, %s2287_s29 }
  0x11   : > { %v2879_v18 = vld [vmem:[%s2876_s25] sm:$0xf]  ;;  %v2882_v19 = vld [vmem:[%s2876_s25 + $0x4] sm:$0xf]  ;;  %v2885_v20 = vld [vmem:[%s2876_s25 + $0x8] sm:$0x1]  ;;  %2326 = vmatprep.subr.msk.bf16.mxu0 %vm569_vm0, %v2323_v15  ;;  %2335 = vmatprep.subr.msk.bf16.mxu1 %vm569_vm0, %v2325_v16 }
  0x12   : > { %v244_v22 = vshrl.u32 %v2879_v18, 16  ;;  %v247_v23 = vshll.u32 %v2879_v18, 16  ;;  %v253_v24 = vshll.u32 %v2882_v19, 16  ;;  %v257_v25 = vshrl.u32 %v2882_v19, 16  ;;  %v2907_v38 = vld [vmem:[%s2876_s25 + $0xc] sm:$0xf] }
  0x13   : > { %v263_v26 = vshll.u32 %v2885_v20, 16  ;;  %v2901_v35 = vcombine.low %v2879_v18, %v2882_v19  ;;  %v2910_v39 = vld [vmem:[%s2876_s25 + $0x10] sm:$0xf]  ;;  %v2919_v42 = vld [vmem:[%s2876_s25 + $0x14] sm:$0x1]  ;;  %v268_v43 = vshrl.u32 %v2907_v38, 16 }
  0x14   : > { %v246_v28 = vrot.slane %v244_v22, 4  ;;  %v249_v29 = vrot.slane %v247_v23, 5  ;;  %v255_v30 = vrot.slane %v253_v24, 5  ;;  %v259_v32 = vrot.slane %v257_v25, 4  ;;  %589 = vmatpush1.bf16.msra.mxu0 %v571_v27  ;;  %702 = vmatpush1.bf16.msra.mxu1 %v577_v31  ;;  %v2927_v49 = vld [vmem:[%s2876_s25 + $0x18] sm:$0xf] }
  0x15   : > { %v265_v33 = vrot.slane %v263_v26, 5  ;;  %v271_v44 = vshll.u32 %v2907_v38, 16  ;;  %v277_v45 = vshll.u32 %v2910_v39, 16  ;;  %v281_v47 = vshrl.u32 %v2910_v39, 16  ;;  %954 = vmatprep.subr.bf16.mxu0 %v2697_v34  ;;  %1067 = vmatprep.subr.bf16.mxu1 %v2700_v37  ;;  %v2934_v55 = vld [vmem:[%s2876_s25 + $0x1c] sm:$0xf] }
  0x16   : > { %v250_v36 = vor.u32 %v249_v29, %v246_v28  ;;  %v260_v41 = vor.u32 %v259_v32, %v255_v30  ;;  %v287_v48 = vshll.u32 %v2919_v42, 16  ;;  %v2931_v50 = vcombine.low %v2907_v38, %v2910_v39  ;;  %v2939_v59 = vld [vmem:[%s2876_s25 + $0x20] sm:$0x1]  ;;  %v2965_v16 = vld [vmem:[%s2876_s25 + $0x24] sm:$0xf] }
  0x17   : > { %v270_v52 = vrot.slane %v268_v43, 4  ;;  %v273_v53 = vrot.slane %v271_v44, 5  ;;  %v279_v54 = vrot.slane %v277_v45, 5  ;;  %v283_v57 = vrot.slane %v281_v47, 4  ;;  %v2968_v17 = vld [vmem:[%s2876_s25 + $0x28] sm:$0xf] }
  0x18   : > { %v251_v46 = vrot.slane %v250_v36, 4  ;;  %v261_v51 = vrot.slane %v260_v41, 4  ;;  %v289_v58 = vrot.slane %v287_v48, 5  ;;  %v292_v60 = vshrl.u32 %v2927_v49, 16  ;;  %v2701_v25 = vld [vmem:[%s3521_s1 + $0x20] ss:$16 sps:$4 sm:$0xff]  }
  0x19   : > { %v274_v0 = vor.u32 %v273_v53, %v270_v52  ;;  %v295_v1 = vshll.u32 %v2927_v49, 16  ;;  %v301_v3 = vshll.u32 %v2934_v55, 16  ;;  %v284_v5 = vor.u32 %v283_v57, %v279_v54  ;;  %v2704_v26 = vld [vmem:[%s3521_s1 + $0x28] ss:$16 sps:$4 sm:$0xff]   ;;  %v2998_v41 = vld [vmem:[%s2876_s25 + $0x34] sm:$0xf] }
  0x1a   : > { %v256_v56 = vsel %vm2914_vm4, %v251_v46, %v255_v30  ;;  %v266_v61 = vsel %vm2914_vm4, %v261_v51, %v265_v33  ;;  %v294_v6 = vrot.slane %v292_v60, 4  ;;  %v305_v7 = vshrl.u32 %v2934_v55, 16  ;;  %v2989_v30 = vld [vmem:[%s2876_s25 + $0x2c] sm:$0x1]  ;;  %v2994_v33 = vld [vmem:[%s2876_s25 + $0x30] sm:$0xf] }
  0x1b   : > { %v2302_v4 = vcombine.low %v256_v56, %v266_v61  ;;  %v275_v9 = vrot.slane %v274_v0, 4  ;;  %v297_v10 = vrot.slane %v295_v1, 5  ;;  %v2956_v11 = vrot.slane %v301_v3, 5  ;;  %v2709_v47 = vld [vmem:[%s3521_s1 + $0x44] ss:$16 sps:$4 sm:$0xff]  }
  0x1c   : > { %v311_v12 = vshll.u32 %v2939_v59, 16  ;;  %v285_v14 = vrot.slane %v284_v5, 4  ;;  %v307_v15 = vrot.slane %v305_v7, 4  ;;  %v2972_v21 = vcombine.low %v2927_v49, %v2934_v55  ;;  %v2707_v57 = vld [vmem:[%s3521_s1 + $0x40] ss:$16 sps:$4 sm:$0xff]  }
  0x1d   : > { %2327 = vmatmul.mubr.msk.bf16.vlgmr.msra.gmra.mrb[0].mxu0 %vm544_vm3, %v2302_v4  ;;  %2336 = vmatmul.mubr.msk.bf16.vlgmr.msra.gmra.mrb[0].mxu1 %vm544_vm3, %v2302_v4  ;;  %v280_v22 = vsel %vm2914_vm4, %v275_v9, %v279_v54  ;;  %v298_v23 = vor.u32 %v297_v10, %v294_v6  ;;  %v316_v27 = vshrl.u32 %v2965_v16, 16  ;;  %v319_v31 = vshll.u32 %v2965_v16, 16  ;;  %v3025_v0 = vld [vmem:[%s2876_s25 + $0x3c] sm:$0xf]  ;;  %v3028_v1 = vld [vmem:[%s2876_s25 + $0x40] sm:$0xf] }
  0x1e   : > { %955 = vmatpush1.bf16.msra.mxu0 %v2695_v62  ;;  %624 = vmatprep.mubr.bf16.mxu0 %v2791_v2  ;;  %v313_v24 = vrot.slane %v311_v12, 5  ;;  %v290_v28 = vsel %vm2914_vm4, %v285_v14, %v289_v58  ;;  %v308_v29 = vor.u32 %v307_v15, %v2956_v11  ;;  %v325_v32 = vshll.u32 %v2968_v17, 16  ;;  %v2712_v58 = vld [vmem:[%s3521_s1 + $0x4c] ss:$16 sps:$4 sm:$0xff]   ;;  %v3036_v9 = vld [vmem:[%s2876_s25 + $0x38] sm:$0x1] }
  0x1f   : > { %737 = vmatprep.mubr.bf16.mxu1 %v2791_v2  ;;  %1068 = vmatpush1.bf16.msra.mxu1 %v2698_v63  ;;  %v299_v34 = vrot.slane %v298_v23, 4  ;;  %v318_v36 = vrot.slane %v316_v27, 4  ;;  %v329_v37 = vshrl.u32 %v2968_v17, 16  ;;  %v2303_v43 = vcombine.low %v280_v22, %v290_v28  ;;  %v2710_v63 = vld [vmem:[%s3521_s1 + $0x48] ss:$16 sps:$4 sm:$0xff]  }
  0x20   : > { %956 = vmatprep.subr.bf16.mxu0 %v2703_v8  ;;  %1069 = vmatprep.subr.bf16.mxu1 %v2706_v13  ;;  %v309_v44 = vrot.slane %v308_v29, 4  ;;  %v321_v45 = vrot.slane %v319_v31, 5  ;;  %v3000_v46 = vrot.slane %v325_v32, 5  ;;  %v335_v51 = vshll.u32 %v2989_v30, 16  ;;  %v3044_v15 = vld [vmem:[%s2876_s25 + $0x48] sm:$0xf] }
  0x21   : > { %v331_v48 = vrot.slane %v329_v37, 4  ;;  %v340_v52 = vshrl.u32 %v2994_v33, 16  ;;  %v343_v53 = vshll.u32 %v2994_v33, 16  ;;  %v349_v56 = vshll.u32 %v2998_v41, 16  ;;  %v3054_v31 = vld [vmem:[%s2876_s25 + $0x4c] sm:$0xf] }
  0x22   : > { %957 = vmatpush1.bf16.msra.mxu0 %v2701_v25  ;;  %v322_v54 = vor.u32 %v321_v45, %v318_v36  ;;  %v304_v60 = vsel %vm2914_vm4, %v299_v34, %v2956_v11  ;;  %v314_v61 = vsel %vm2914_vm4, %v309_v44, %v313_v24  ;;  %v353_v6 = vshrl.u32 %v2998_v41, 16  ;;  %v3059_v36 = vld [vmem:[%s2876_s25 + $0x44] sm:$0x1] }
  0x23   : > { %1070 = vmatpush1.bf16.msra.mxu1 %v2704_v26  ;;  %958 = vmatprep.subr.bf16.mxu0 %v2709_v47  ;;  %v332_v62 = vor.u32 %v331_v48, %v3000_v46  ;;  %v342_v4 = vrot.slane %v340_v52, 4  ;;  %v345_v5 = vrot.slane %v343_v53, 5  ;;  %v337_v8 = vrot.slane %v335_v51, 5  ;;  %v238_v45 = vld [vmem:[%s3521_s1 + $0x60] sm:$0xff]  ;;  %v239_v47 = vld [vmem:[%s3521_s1 + $0x68] sm:$0xff] }
  0x24   : > { %v323_v3 = vrot.slane %v322_v54, 4  ;;  %v364_v10 = vshrl.u32 %v3025_v0, 16  ;;  %v367_v11 = vshll.u32 %v3025_v0, 16  ;;  %v3040_v12 = vrot.slane %v349_v56, 5  ;;  %1071 = vmatprep.subr.bf16.mxu1 %v2712_v58  ;;  %v3073_v51 = vld [vmem:[%s2876_s25 + $0x50] sm:$0x1] }
  0x25   : > { %2328 = vmatmul.mubr.msk.bf16.gmra.mrb[4].mxu0 %vm544_vm3, %v2303_v43  ;;  %2337 = vmatmul.mubr.msk.bf16.gmra.mrb[4].mxu1 %vm544_vm3, %v2303_v43  ;;  %v333_v7 = vrot.slane %v332_v62, 4  ;;  %v355_v13 = vrot.slane %v353_v6, 4  ;;  %v373_v14 = vshll.u32 %v3028_v1, 16  ;;  %v2304_v22 = vcombine.low %v304_v60, %v314_v61  ;;  %v3081_v61 = vld [vmem:[%s2876_s25 + $0x54] sm:$0xf] }
  0x26   : > { %634 = vmatprep.mubr.bf16.mxu0 %v2791_v2  ;;  %747 = vmatprep.mubr.bf16.mxu1 %v2791_v2  ;;  %v328_v23 = vsel %vm2914_vm4, %v323_v3, %v3000_v46  ;;  %v346_v24 = vor.u32 %v345_v5, %v342_v4  ;;  %v359_v25 = vshll.u32 %v3036_v9, 16  ;;  %v377_v26 = vshrl.u32 %v3028_v1, 16  ;;  %v2720_v5 = vld [vmem:[%s3521_s1 + $0xe4] ss:$16 sps:$4 sm:$0xff]  }
  0x27   : > { %959 = vmatpush1.bf16.msra.mxu0 %v2707_v57  ;;  %1072 = vmatpush1.bf16.msra.mxu1 %v2710_v63  ;;  %v338_v27 = vsel %vm2914_vm4, %v333_v7, %v337_v8  ;;  %v366_v28 = vrot.slane %v364_v10, 4  ;;  %v369_v29 = vrot.slane %v367_v11, 5  ;;  %v388_v32 = vshrl.u32 %v3044_v15, 16  ;;  %v2723_v11 = vld [vmem:[%s3521_s1 + $0xec] ss:$16 sps:$4 sm:$0xff]  }
  0x28   : > { %v356_v34 = vor.u32 %v355_v13, %v3040_v12  ;;  %v3061_v37 = vrot.slane %v373_v14, 5  ;;  %v379_v43 = vrot.slane %v377_v26, 4  ;;  %v391_v44 = vshll.u32 %v3044_v15, 16 }
  0x29   : > { %v390_v46 = vrot.slane %v388_v32, 4  ;;  %v361_v48 = vrot.slane %v359_v25, 5  ;;  %v397_v53 = vshll.u32 %v3054_v31, 16  ;;  %v401_v54 = vshrl.u32 %v3054_v31, 16 }
  0x2a   : > { %v393_v52 = vrot.slane %v391_v44, 5  ;;  %v2305_v56 = vcombine.low %v328_v23, %v338_v27  ;;  %v347_v57 = vrot.slane %v346_v24, 4  ;;  %v370_v58 = vor.u32 %v369_v29, %v366_v28  ;;  %v3104_v28 = vld [vmem:[%s2876_s25 + $0x58] sm:$0xf] }
  0x2b   : > { %v383_v60 = vshll.u32 %v3059_v36, 16  ;;  %v357_v62 = vrot.slane %v356_v34, 4  ;;  %v380_v63 = vor.u32 %v379_v43, %v3061_v37  ;;  %v2365_v3 = vcombine.high %v238_v45, %v238_v45 }
  0x2c   : > { %v2364_v4 = vcombine.low %v238_v45, %v238_v45  ;;  %v394_v6 = vor.u32 %v393_v52, %v390_v46  ;;  %v407_v7 = vshll.u32 %v3073_v51, 16  ;;  %v2367_v8 = vcombine.high %v239_v47, %v239_v47 }
  0x2d   : > { %2329 = vmatmul.mubr.msk.bf16.gmra.mrb[8].mxu0 %vm544_vm3, %v2304_v22  ;;  %2338 = vmatmul.mubr.msk.bf16.gmra.mrb[8].mxu1 %vm544_vm3, %v2304_v22  ;;  %v2366_v10 = vcombine.low %v239_v47, %v239_v47  ;;  %v3091_v13 = vrot.slane %v397_v53, 5  ;;  %v403_v14 = vrot.slane %v401_v54, 4  ;;  %v412_v23 = vshrl.u32 %v3081_v61, 16 }
  0x2e   : > { %644 = vmatprep.mubr.bf16.mxu0 %v2791_v2  ;;  %757 = vmatprep.mubr.bf16.mxu1 %v2791_v2  ;;  %v943_v22 = vsel %vm569_vm0, %v2364_v4, 0  ;;  %v1193_v24 = vrot.slane %v2882_v19, 5  ;;  %v1196_v25 = vrot.slane %v2885_v20, 5  ;;  %v352_v26 = vsel %vm2914_vm4, %v347_v57, %v3040_v12  ;;  %v3109_v19 = vld [vmem:[%s2876_s25 + $0x5c] sm:$0x1] }
  0x2f   : > { %2368 = vmatprep.subr.msk.bf16.mxu0 %vm569_vm0, %v2365_v3  ;;  %2377 = vmatprep.subr.msk.bf16.mxu1 %vm569_vm0, %v2367_v8  ;;  %v949_v27 = vsel %vm569_vm0, %v2366_v10, 0  ;;  %v362_v29 = vsel %vm2914_vm4, %v357_v62, %v361_v48  ;;  %v371_v32 = vrot.slane %v370_v58, 4  ;;  %v381_v34 = vrot.slane %v380_v63, 4 }
  0x30   : > { %961 = vmatpush1.bf16.msra.mxu0 %v943_v22  ;;  %v385_v43 = vrot.slane %v383_v60, 5  ;;  %1074 = vmatpush1.bf16.msra.mxu1 %v949_v27  ;;  %v3111_v20 = vrot.slane %v394_v6, 4  ;;  %v3113_v12 = vrot.slane %v407_v7, 5  ;;  %v415_v44 = vshll.u32 %v3081_v61, 16 }
  0x31   : > { %1392 = vmatprep.subr.bf16.mxu0 %v2720_v5  ;;  %1505 = vmatprep.subr.bf16.mxu1 %v2723_v11  ;;  %v3118_v45 = vcombine.low %v2965_v16, %v2968_v17  ;;  %v404_v46 = vor.u32 %v403_v14, %v3091_v13  ;;  %v3123_v47 = vrot.slane %v412_v23, 4  ;;  %v421_v48 = vshll.u32 %v3104_v28, 16 }
  0x32   : > { %v3128_v52 = vcombine.low %v2994_v33, %v2998_v41  ;;  %v425_v53 = vshrl.u32 %v3104_v28, 16  ;;  %v431_v54 = vshll.u32 %v3109_v19, 16  ;;  %v3140_v57 = vcombine.low %v3044_v15, %v3054_v31 }
  0x33   : > { %v2306_v58 = vcombine.low %v352_v26, %v362_v29  ;;  %v376_v60 = vsel %vm2914_vm4, %v371_v32, %v3061_v37  ;;  %v386_v62 = vsel %vm2914_vm4, %v381_v34, %v385_v43  ;;  %v417_v63 = vrot.slane %v415_v44, 5  ;;  %v2729_v37 = vld [vmem:[%s3521_s1 + $0x108] ss:$16 sps:$4 sm:$0xff]  }
  0x34   : > { %v3149_v3 = vcombine.low %v3081_v61, %v3104_v28  ;;  %v3151_v4 = vrot.slane %v404_v46, 4  ;;  %v3153_v5 = vrot.slane %v421_v48, 5  ;;  %v2386_v6 = vrot.slane %v2879_v18, 9 }
  0x35   : > { %2330 = vmatmul.mubr.msk.bf16.gmra.mrb[12].mxu0 %vm544_vm3, %v2305_v56  ;;  %2339 = vmatmul.mubr.msk.bf16.gmra.mrb[12].mxu1 %vm544_vm3, %v2305_v56  ;;  %v3136_v56 = vcombine.low %v3025_v0, %v3028_v1  ;;  %v427_v7 = vrot.slane %v425_v53, 4  ;;  %v3156_v8 = vrot.slane %v431_v54, 5  ;;  %v1195_v10 = vrot.slane %v1193_v24, 4 }
  0x36   : > { %654 = vmatprep.mubr.bf16.mxu0 %v2791_v2  ;;  %767 = vmatprep.mubr.bf16.mxu1 %v2791_v2  ;;  %v2387_v11 = vrot.slane %v2907_v38, 9  ;;  %v2307_v14 = vcombine.low %v376_v60, %v386_v62  ;;  %v1194_v22 = vsel %vm3158_vm7, %v2386_v6, %v1193_v24  ;;  %v1200_v23 = vrot.slane %v2910_v39, 5 }
  0x37   : > { %v1203_v26 = vrot.slane %v2919_v42, 5  ;;  %v418_v18 = vor.u32 %v417_v63, %v3123_v47  ;;  %v1197_v27 = vsel %vm3158_vm7, %v1195_v10, %v1196_v25  ;;  %v2388_v29 = vrot.slane %v2927_v49, 9 }
  0x38   : > { %v1207_v32 = vrot.slane %v2934_v55, 5  ;;  %v3174_v38 = vcombine.low %v1194_v22, %v1197_v27  ;;  %v1201_v39 = vsel %vm3158_vm7, %v2387_v11, %v1200_v23  ;;  %v1202_v24 = vrot.slane %v1200_v23, 4 }
  0x39   : > { %v1210_v42 = vrot.slane %v2939_v59, 5  ;;  %v2389_v25 = vrot.slane %v2965_v16, 9  ;;  %v1214_v34 = vrot.slane %v2968_v17, 5  ;;  %v1217_v44 = vrot.slane %v2989_v30, 5 }
  0x3a   : > { %v1208_v49 = vsel %vm3158_vm7, %v2388_v29, %v1207_v32  ;;  %v1209_v55 = vrot.slane %v1207_v32, 4  ;;  %v1204_v43 = vsel %vm3158_vm7, %v1202_v24, %v1203_v26  ;;  %v2390_v46 = vrot.slane %v2994_v33, 9 }
  0x3b   : > { %v1221_v59 = vrot.slane %v2998_v41, 5  ;;  %v3190_v47 = vcombine.low %v1201_v39, %v1204_v43  ;;  %v1215_v53 = vsel %vm3158_vm7, %v2389_v25, %v1214_v34  ;;  %v1216_v16 = vrot.slane %v1214_v34, 4  ;;  %v2736_v25 = vld [vmem:[%s3521_s1 + $0x124] ss:$16 sps:$4 sm:$0xff]   ;;  %v2407_v43 = vld [vmem:[%s3521_s1 + $0x148] sm:$0xff] }
  0x3c   : > { %v1211_v48 = vsel %vm3158_vm7, %v1209_v55, %v1210_v42  ;;  %v1224_v30 = vrot.slane %v3036_v9, 5  ;;  %v2391_v41 = vrot.slane %v3025_v0, 9  ;;  %v1228_v60 = vrot.slane %v3028_v1, 5  ;;  %v2406_v34 = vld [vmem:[%s3521_s1 + $0x140] sm:$0xff] }
  0x3d   : > { %2331 = vmatmul.mubr.msk.bf16.gmra.mrb[16].mxu0 %vm544_vm3, %v2306_v58  ;;  %2340 = vmatmul.mubr.msk.bf16.gmra.mrb[16].mxu1 %vm544_vm3, %v2306_v58  ;;  %v3196_v54 = vcombine.low %v1208_v49, %v1211_v48  ;;  %v1222_v17 = vsel %vm3158_vm7, %v2390_v46, %v1221_v59  ;;  %v1223_v58 = vrot.slane %v1221_v59, 4  ;;  %v1218_v33 = vsel %vm3158_vm7, %v1216_v16, %v1217_v44  ;;  %v2734_v44 = vld [vmem:[%s3521_s1 + $0x120] ss:$16 sps:$4 sm:$0xff]   ;;  %v2737_v46 = vld [vmem:[%s3521_s1 + $0x128] ss:$16 sps:$4 sm:$0xff]  }
  0x3e   : > { %664 = vmatprep.mubr.bf16.mxu0 %v2791_v2  ;;  %777 = vmatprep.mubr.bf16.mxu1 %v2791_v2  ;;  %v1231_v62 = vrot.slane %v3059_v36, 5  ;;  %v428_v63 = vor.u32 %v427_v7, %v3153_v5  ;;  %v3207_v6 = vcombine.low %v1215_v53, %v1218_v33  ;;  %v419_v11 = vrot.slane %v418_v18, 4 }
  0x3f   : > { %v1225_v10 = vsel %vm3158_vm7, %v1223_v58, %v1224_v30  ;;  %v1229_v9 = vsel %vm3158_vm7, %v2391_v41, %v1228_v60  ;;  %v1230_v23 = vrot.slane %v1228_v60, 4  ;;  %v400_v0 = vsel %vm2914_vm4, %v3111_v20, %v3091_v13 }
  0x40   : > { %v3211_v22 = vcombine.low %v1222_v17, %v1225_v10  ;;  %v410_v1 = vsel %vm2914_vm4, %v3151_v4, %v3113_v12  ;;  %v2392_v7 = vrot.slane %v3044_v15, 9  ;;  %v1238_v26 = vrot.slane %v3073_v51, 5 }
  0x41   : > { %v1232_v36 = vsel %vm3158_vm7, %v1230_v23, %v1231_v62  ;;  %v429_v13 = vrot.slane %v428_v63, 4  ;;  %v2308_v4 = vcombine.low %v400_v0, %v410_v1  ;;  %v424_v15 = vsel %vm2914_vm4, %v419_v11, %v3153_v5 }
  0x42   : > { %v3232_v18 = vcombine.low %v1229_v9, %v1232_v36  ;;  %v2393_v51 = vrot.slane %v3081_v61, 9  ;;  %v1242_v32 = vrot.slane %v3104_v28, 5  ;;  %v1245_v39 = vrot.slane %v3109_v19, 5  ;;  %v2721_v61 = vld [vmem:[%s3521_s1 + $0xe8] ss:$16 sps:$4 sm:$0xff]  }
  0x43   : > { %v2728_v28 = vld [vmem:[%s3521_s1 + $0x104] ss:$16 sps:$4 sm:$0xff]   ;;  %v2731_v19 = vld [vmem:[%s3521_s1 + $0x10c] ss:$16 sps:$4 sm:$0xff]   ;;  %v2429_v59 = vcombine.high %v2406_v34, %v2406_v34  ;;  %v2428_v48 = vcombine.low %v2406_v34, %v2406_v34  ;;  %v2431_v53 = vcombine.high %v2407_v43, %v2407_v43  ;;  %v2430_v16 = vcombine.low %v2407_v43, %v2407_v43 }
  0x44   : > { %v1243_v24 = vsel %vm3158_vm7, %v2393_v51, %v1242_v32  ;;  %v1244_v42 = vrot.slane %v1242_v32, 4 }
  0x45   : > { %2332 = vmatmul.mubr.msk.bf16.gmra.mrb[20].mxu0 %vm544_vm3, %v2307_v14  ;;  %2341 = vmatmul.mubr.msk.bf16.gmra.mrb[20].mxu1 %vm544_vm3, %v2307_v14  ;;  %v1235_v14 = vrot.slane %v3054_v31, 5  ;;  %v434_v31 = vsel %vm2914_vm4, %v429_v13, %v3156_v8  ;;  %v2726_v8 = vld [vmem:[%s3521_s1 + $0x100] ss:$16 sps:$4 sm:$0xff]   ;;  %v1381_v17 = vsel %vm569_vm0, %v2428_v48, 0  ;;  %v1387_v58 = vsel %vm569_vm0, %v2430_v16, 0 }
  0x46   : > { %674 = vmatprep.mubr.bf16.mxu0 %v2791_v2  ;;  %787 = vmatprep.mubr.bf16.mxu1 %v2791_v2  ;;  %v2309_v49 = vcombine.low %v424_v15, %v434_v31  ;;  %v1246_v5 = vsel %vm3158_vm7, %v1244_v42, %v1245_v39 }
  0x47   : > { %v1236_v20 = vsel %vm3158_vm7, %v2392_v7, %v1235_v14  ;;  %v1237_v12 = vrot.slane %v1235_v14, 4  ;;  %v3257_v55 = vcombine.low %v1243_v24, %v1246_v5 }
  0x49   : > { %v1239_v27 = vsel %vm3158_vm7, %v1237_v12, %v1238_v26 }
  0x4a   : > { %v3238_v29 = vcombine.low %v1236_v20, %v1239_v27 }
  0x4d   : > { %2333 = vmatmul.mubr.msk.bf16.gmra.mrb[24].mxu0 %vm544_vm3, %v2308_v4  ;;  %2342 = vmatmul.mubr.msk.bf16.gmra.mrb[24].mxu1 %vm544_vm3, %v2308_v4 }
  0x4e   : > { %684 = vmatprep.mubr.bf16.mxu0 %v2791_v2  ;;  %797 = vmatprep.mubr.bf16.mxu1 %v2791_v2 }
  0x55   : > { %2334 = vmatmul.mubr.msk.bf16.gmra.mrb[28].mxu0 %vm544_vm3, %v2309_v49  ;;  %2343 = vmatmul.mubr.msk.bf16.gmra.mrb[28].mxu1 %vm544_vm3, %v2309_v49 }
  0x56   : > { %986 = vmatprep.mubr.bf16.mxu0 %v2791_v2  ;;  %1099 = vmatprep.mubr.bf16.mxu1 %v2791_v2 }
  0x5d   : > { %2369 = vmatmul.mubr.msk.bf16.vlgmr.msra.gmra.mrb[0].mxu0 %vm544_vm3, %v2901_v35  ;;  %2378 = vmatmul.mubr.msk.bf16.vlgmr.msra.gmra.mrb[0].mxu1 %vm544_vm3, %v2901_v35  ;;  %v2739_v35 = vld [vmem:[%s3521_s1 + $0x12c] ss:$16 sps:$4 sm:$0xff]  }
  0x5e   : > { %1393 = vmatpush1.bf16.msra.mxu0 %v2718_v40  ;;  %996 = vmatprep.mubr.bf16.mxu0 %v2791_v2 }
  0x5f   : > { %1109 = vmatprep.mubr.bf16.mxu1 %v2791_v2  ;;  %1506 = vmatpush1.bf16.msra.mxu1 %v2721_v61 }
  0x60   : > { %1394 = vmatprep.subr.bf16.mxu0 %v2728_v28  ;;  %1507 = vmatprep.subr.bf16.mxu1 %v2731_v19 }
  0x62   : > { %1395 = vmatpush1.bf16.msra.mxu0 %v2726_v8 }
  0x63   : > { %1508 = vmatpush1.bf16.msra.mxu1 %v2729_v37  ;;  %1396 = vmatprep.subr.bf16.mxu0 %v2736_v25 }
  0x64   : > { %1509 = vmatprep.subr.bf16.mxu1 %v2739_v35 }
  0x65   : > { %2370 = vmatmul.mubr.msk.bf16.gmra.mrb[4].mxu0 %vm544_vm3, %v2931_v50  ;;  %2379 = vmatmul.mubr.msk.bf16.gmra.mrb[4].mxu1 %vm544_vm3, %v2931_v50 }
  0x66   : > { %1006 = vmatprep.mubr.bf16.mxu0 %v2791_v2  ;;  %1119 = vmatprep.mubr.bf16.mxu1 %v2791_v2 }
  0x67   : > { %1397 = vmatpush1.bf16.msra.mxu0 %v2734_v44  ;;  %1510 = vmatpush1.bf16.msra.mxu1 %v2737_v46 }
  0x68   : > { %2432 = vmatprep.subr.msk.bf16.mxu0 %vm569_vm0, %v2429_v59  ;;  %2441 = vmatprep.subr.msk.bf16.mxu1 %vm569_vm0, %v2431_v53 }
  0x6b   : > { %1399 = vmatpush1.bf16.msra.mxu0 %v1381_v17  ;;  %1512 = vmatpush1.bf16.msra.mxu1 %v1387_v58 }
  0x6d   : > { %2371 = vmatmul.mubr.msk.bf16.gmra.mrb[8].mxu0 %vm544_vm3, %v2972_v21  ;;  %2380 = vmatmul.mubr.msk.bf16.gmra.mrb[8].mxu1 %vm544_vm3, %v2972_v21 }
  0x6e   : > { %1016 = vmatprep.mubr.bf16.mxu0 %v2791_v2  ;;  %1129 = vmatprep.mubr.bf16.mxu1 %v2791_v2 }
  0x75   : > { %2372 = vmatmul.mubr.msk.bf16.gmra.mrb[12].mxu0 %vm544_vm3, %v3118_v45  ;;  %2381 = vmatmul.mubr.msk.bf16.gmra.mrb[12].mxu1 %vm544_vm3, %v3118_v45 }
  0x76   : > { %1026 = vmatprep.mubr.bf16.mxu0 %v2791_v2  ;;  %1139 = vmatprep.mubr.bf16.mxu1 %v2791_v2 }
  0x7d   : > { %2373 = vmatmul.mubr.msk.bf16.gmra.mrb[16].mxu0 %vm544_vm3, %v3128_v52  ;;  %2382 = vmatmul.mubr.msk.bf16.gmra.mrb[16].mxu1 %vm544_vm3, %v3128_v52 }
  0x7e   : > { %1036 = vmatprep.mubr.bf16.mxu0 %v2791_v2  ;;  %1149 = vmatprep.mubr.bf16.mxu1 %v2791_v2 }
  0x85   : > { %2374 = vmatmul.mubr.msk.bf16.gmra.mrb[20].mxu0 %vm544_vm3, %v3136_v56  ;;  %2383 = vmatmul.mubr.msk.bf16.gmra.mrb[20].mxu1 %vm544_vm3, %v3136_v56 }
  0x86   : > { %1046 = vmatprep.mubr.bf16.mxu0 %v2791_v2  ;;  %1159 = vmatprep.mubr.bf16.mxu1 %v2791_v2 }
  0x8d   : > { %2375 = vmatmul.mubr.msk.bf16.gmra.mrb[24].mxu0 %vm544_vm3, %v3140_v57  ;;  %2384 = vmatmul.mubr.msk.bf16.gmra.mrb[24].mxu1 %vm544_vm3, %v3140_v57 }
  0x8e   : > { %1056 = vmatprep.mubr.bf16.mxu0 %v2791_v2  ;;  %1169 = vmatprep.mubr.bf16.mxu1 %v2791_v2 }
  0x95   : > { %2376 = vmatmul.mubr.msk.bf16.gmra.mrb[28].mxu0 %vm544_vm3, %v3149_v3  ;;  %2385 = vmatmul.mubr.msk.bf16.gmra.mrb[28].mxu1 %vm544_vm3, %v3149_v3 }
  0x96   : > { %1424 = vmatprep.mubr.bf16.mxu0 %v2791_v2  ;;  %1537 = vmatprep.mubr.bf16.mxu1 %v2791_v2 }
  0x9d   : > { %2433 = vmatmul.mubr.msk.bf16.vlgmr.msra.gmra.mrb[0].mxu0 %vm544_vm3, %v3174_v38  ;;  %2442 = vmatmul.mubr.msk.bf16.vlgmr.msra.gmra.mrb[0].mxu1 %vm544_vm3, %v3174_v38 }
  0x9e   : > { %1434 = vmatprep.mubr.bf16.mxu0 %v2791_v2  ;;  %1547 = vmatprep.mubr.bf16.mxu1 %v2791_v2 }
  0xa5   : > { %2434 = vmatmul.mubr.msk.bf16.gmra.mrb[4].mxu0 %vm544_vm3, %v3190_v47  ;;  %2443 = vmatmul.mubr.msk.bf16.gmra.mrb[4].mxu1 %vm544_vm3, %v3190_v47 }
  0xa6   : > { %1444 = vmatprep.mubr.bf16.mxu0 %v2791_v2  ;;  %1557 = vmatprep.mubr.bf16.mxu1 %v2791_v2 }
  0xad   : > { %2435 = vmatmul.mubr.msk.bf16.gmra.mrb[8].mxu0 %vm544_vm3, %v3196_v54  ;;  %2444 = vmatmul.mubr.msk.bf16.gmra.mrb[8].mxu1 %vm544_vm3, %v3196_v54 }
  0xae   : > { %1454 = vmatprep.mubr.bf16.mxu0 %v2791_v2  ;;  %1567 = vmatprep.mubr.bf16.mxu1 %v2791_v2 }
  0xb5   : > { %2436 = vmatmul.mubr.msk.bf16.gmra.mrb[12].mxu0 %vm544_vm3, %v3207_v6  ;;  %2445 = vmatmul.mubr.msk.bf16.gmra.mrb[12].mxu1 %vm544_vm3, %v3207_v6 }
  0xb6   : > { %1464 = vmatprep.mubr.bf16.mxu0 %v2791_v2  ;;  %1577 = vmatprep.mubr.bf16.mxu1 %v2791_v2 }
  0xbd   : > { %2437 = vmatmul.mubr.msk.bf16.gmra.mrb[16].mxu0 %vm544_vm3, %v3211_v22  ;;  %2446 = vmatmul.mubr.msk.bf16.gmra.mrb[16].mxu1 %vm544_vm3, %v3211_v22 }
  0xbe   : > { %1474 = vmatprep.mubr.bf16.mxu0 %v2791_v2  ;;  %1587 = vmatprep.mubr.bf16.mxu1 %v2791_v2 }
  0xc5   : > { %2438 = vmatmul.mubr.msk.bf16.gmra.mrb[20].mxu0 %vm544_vm3, %v3232_v18  ;;  %2447 = vmatmul.mubr.msk.bf16.gmra.mrb[20].mxu1 %vm544_vm3, %v3232_v18 }
  0xc6   : > { %1484 = vmatprep.mubr.bf16.mxu0 %v2791_v2  ;;  %1597 = vmatprep.mubr.bf16.mxu1 %v2791_v2 }
  0xcd   : > { %2439 = vmatmul.mubr.msk.bf16.gmra.mrb[24].mxu0 %vm544_vm3, %v3238_v29  ;;  %2448 = vmatmul.mubr.msk.bf16.gmra.mrb[24].mxu1 %vm544_vm3, %v3238_v29 }
  0xce   : > { %1494 = vmatprep.mubr.bf16.mxu0 %v2791_v2  ;;  %1607 = vmatprep.mubr.bf16.mxu1 %v2791_v2 }
  0xd5   : > { %2440 = vmatmul.mubr.msk.bf16.gmra.mrb[28].mxu0 %vm544_vm3, %v3257_v55  ;;  %2449 = vmatmul.mubr.msk.bf16.gmra.mrb[28].mxu1 %vm544_vm3, %v3257_v55 }
  0xd6   : > { %1821 = vmatprep.mubr.bf16.mxu0 %v2791_v2  ;;  %1862 = vmatprep.mubr.bf16.mxu1 %v2791_v2 }
 0x170   : > { %v1426_v50 = vpop.f32.mrb[0].mxu0  ;;  %v1539_v21 = vpop.f32.mrb[0].mxu1 }
 0x171   : > { %v1428_v45 = vpop.f32.mrb[1].mxu0  ;;  %v1541_v52 = vpop.f32.mrb[1].mxu1  ;;  %v1682_v3 = vmax.f32 %v1426_v50, 0.0  ;;  %v1684_v38 = vmax.f32 %v1539_v21, 0.0 }
 0x172   : > { %v1430_v56 = vpop.f32.mrb[2].mxu0  ;;  %v1543_v57 = vpop.f32.mrb[2].mxu1  ;;  %v1683_v41 = vmax.f32 %v1428_v45, 0.0  ;;  %v1685_v60 = vmax.f32 %v1541_v52, 0.0 }
 0x173   : > { %v1686_v47 = vmax.f32 %v1430_v56, 0.0  ;;  %v1688_v54 = vmax.f32 %v1543_v57, 0.0  ;;  %v1432_v30 = vpop.f32.mrb[3].mxu0  ;;  %v1545_v33 = vpop.f32.mrb[3].mxu1 }
 0x174   : > { %v1687_v62 = vmax.f32 %v1432_v30, 0.0  ;;  %v1689_v63 = vmax.f32 %v1545_v33, 0.0 }
 0x175   : > { %v1746_v6 = vpack.c.bf16 %v1686_v47, %v1682_v3  ;;  %v1748_v10 = vpack.c.bf16 %v1688_v54, %v1684_v38 }
 0x176   : > { %v1747_v11 = vpack.c.bf16 %v1687_v62, %v1683_v41  ;;  %v1749_v2 = vpack.c.bf16 %v1689_v63, %v1685_v60 }
 0x178   : > { %v1436_v22 = vpop.f32.mrb[4].mxu0  ;;  %v1549_v9 = vpop.f32.mrb[4].mxu1  ;;  %1789 = vmatprep.subr.bf16.mxu0 %v1747_v11  ;;  %1830 = vmatprep.subr.bf16.mxu1 %v1749_v2 }
 0x179   : > { %v1438_v23 = vpop.f32.mrb[5].mxu0  ;;  %v1551_v0 = vpop.f32.mrb[5].mxu1  ;;  %1790 = vmatpush1.bf16.msra.mxu0 %v1746_v6  ;;  %1831 = vmatpush1.bf16.msra.mxu1 %v1748_v10  ;;  %v1690_v7 = vmax.f32 %v1436_v22, 0.0  ;;  %v1692_v14 = vmax.f32 %v1549_v9, 0.0 }
 0x17a   : > { %v1440_v1 = vpop.f32.mrb[6].mxu0  ;;  %v1553_v36 = vpop.f32.mrb[6].mxu1  ;;  %v1691_v12 = vmax.f32 %v1438_v23, 0.0  ;;  %v1693_v4 = vmax.f32 %v1551_v0, 0.0 }
 0x17b   : > { %v1694_v26 = vmax.f32 %v1440_v1, 0.0  ;;  %v1696_v18 = vmax.f32 %v1553_v36, 0.0  ;;  %v1442_v13 = vpop.f32.mrb[7].mxu0  ;;  %v1555_v20 = vpop.f32.mrb[7].mxu1 }
 0x17c   : > { %v1695_v27 = vmax.f32 %v1442_v13, 0.0  ;;  %v1697_v29 = vmax.f32 %v1555_v20, 0.0 }
 0x17d   : > { %v1750_v15 = vpack.c.bf16 %v1694_v26, %v1690_v7  ;;  %v1752_v31 = vpack.c.bf16 %v1696_v18, %v1692_v14 }
 0x17e   : > { %v1751_v51 = vpack.c.bf16 %v1695_v27, %v1691_v12  ;;  %v1753_v32 = vpack.c.bf16 %v1697_v29, %v1693_v4 }
 0x180   : > { %v1446_v39 = vpop.f32.mrb[8].mxu0  ;;  %v1559_v24 = vpop.f32.mrb[8].mxu1  ;;  %1791 = vmatprep.subr.bf16.mxu0 %v1751_v51  ;;  %1832 = vmatprep.subr.bf16.mxu1 %v1753_v32 }
 0x181   : > { %v1448_v42 = vpop.f32.mrb[9].mxu0  ;;  %v1561_v49 = vpop.f32.mrb[9].mxu1  ;;  %1792 = vmatpush1.bf16.msra.mxu0 %v1750_v15  ;;  %1833 = vmatpush1.bf16.msra.mxu1 %v1752_v31  ;;  %v1698_v40 = vmax.f32 %v1446_v39, 0.0  ;;  %v1700_v61 = vmax.f32 %v1559_v24, 0.0 }
 0x182   : > { %v1450_v5 = vpop.f32.mrb[10].mxu0  ;;  %v1563_v55 = vpop.f32.mrb[10].mxu1  ;;  %v1699_v25 = vmax.f32 %v1448_v42, 0.0  ;;  %v1701_v35 = vmax.f32 %v1561_v49, 0.0  ;;  %v1778_v42 = vlaneseq }
 0x183   : > { %v1702_v28 = vmax.f32 %v1450_v5, 0.0  ;;  %v1704_v19 = vmax.f32 %v1563_v55, 0.0  ;;  %v1452_v8 = vpop.f32.mrb[11].mxu0  ;;  %v1565_v37 = vpop.f32.mrb[11].mxu1 }
 0x184   : > { %v1703_v34 = vmax.f32 %v1452_v8, 0.0  ;;  %v1705_v43 = vmax.f32 %v1565_v37, 0.0 }
 0x185   : > { %v1754_v44 = vpack.c.bf16 %v1702_v28, %v1698_v40  ;;  %v1756_v46 = vpack.c.bf16 %v1704_v19, %v1700_v61 }
 0x186   : > { %v1755_v59 = vpack.c.bf16 %v1703_v34, %v1699_v25  ;;  %v1757_v48 = vpack.c.bf16 %v1705_v43, %v1701_v35 }
 0x188   : > { %v1456_v53 = vpop.f32.mrb[12].mxu0  ;;  %v1569_v16 = vpop.f32.mrb[12].mxu1  ;;  %1793 = vmatprep.subr.bf16.mxu0 %v1755_v59  ;;  %1834 = vmatprep.subr.bf16.mxu1 %v1757_v48 }
 0x189   : > { %v1458_v17 = vpop.f32.mrb[13].mxu0  ;;  %v1571_v58 = vpop.f32.mrb[13].mxu1  ;;  %1794 = vmatpush1.bf16.msra.mxu0 %v1754_v44  ;;  %1835 = vmatpush1.bf16.msra.mxu1 %v1756_v46  ;;  %v1706_v45 = vmax.f32 %v1456_v53, 0.0  ;;  %v1708_v52 = vmax.f32 %v1569_v16, 0.0  ;;  %v1779_v46 = vshrl.u32 %v1778_v42, 7 }
 0x18a   : > { %v1460_v50 = vpop.f32.mrb[14].mxu0  ;;  %v1573_v21 = vpop.f32.mrb[14].mxu1  ;;  %v1707_v47 = vmax.f32 %v1458_v17, 0.0  ;;  %v1709_v54 = vmax.f32 %v1571_v58, 0.0 }
 0x18b   : > { %v1710_v56 = vmax.f32 %v1460_v50, 0.0  ;;  %v1712_v57 = vmax.f32 %v1573_v21, 0.0  ;;  %v1462_v3 = vpop.f32.mrb[15].mxu0  ;;  %v1575_v38 = vpop.f32.mrb[15].mxu1  ;;  %v1782_v50 = vmul.u32 16, %v1779_v46  ;;  %v2765_v46 = vld [vmem:[%s3522_s2 + $0xe0] sm:$0xff]  }
 0x18c   : > { %v1711_v30 = vmax.f32 %v1462_v3, 0.0  ;;  %v1713_v33 = vmax.f32 %v1575_v38, 0.0 }
 0x18d   : > { %v1758_v41 = vpack.c.bf16 %v1710_v56, %v1706_v45  ;;  %v1760_v60 = vpack.c.bf16 %v1712_v57, %v1708_v52 }
 0x18e   : > { %v1759_v62 = vpack.c.bf16 %v1711_v30, %v1707_v47  ;;  %v1761_v63 = vpack.c.bf16 %v1713_v33, %v1709_v54 }
 0x190   : > { %v1466_v6 = vpop.f32.mrb[16].mxu0  ;;  %v1579_v10 = vpop.f32.mrb[16].mxu1  ;;  %1795 = vmatprep.subr.bf16.mxu0 %v1759_v62  ;;  %1836 = vmatprep.subr.bf16.mxu1 %v1761_v63  ;;  %v1781_v63 = vand.u32 127, %v1778_v42  ;;  %v2750_v42 = vld [vmem:[%s3522_s2 + $0x80] sm:$0xff]  }
 0x191   : > { %v1468_v11 = vpop.f32.mrb[17].mxu0  ;;  %v1581_v2 = vpop.f32.mrb[17].mxu1  ;;  %1796 = vmatpush1.bf16.msra.mxu0 %v1758_v41  ;;  %1837 = vmatpush1.bf16.msra.mxu1 %v1760_v60  ;;  %v1714_v23 = vmax.f32 %v1466_v6, 0.0  ;;  %v1716_v0 = vmax.f32 %v1579_v10, 0.0  ;;  %v1784_v6 = vadd.s32 16, %v1782_v50 }
 0x192   : > { %v1470_v22 = vpop.f32.mrb[18].mxu0  ;;  %v1583_v9 = vpop.f32.mrb[18].mxu1  ;;  %v1715_v26 = vmax.f32 %v1468_v11, 0.0  ;;  %v1717_v18 = vmax.f32 %v1581_v2, 0.0  ;;  %vm3399_vm8 = vcmp.ge.s32.totalorder %v1781_v63, %v1782_v50  ;;  %v2771_v50 = vld [vmem:[%s3522_s2 + $0x70] sm:$0xff]  }
 0x193   : > { %v1718_v1 = vmax.f32 %v1470_v22, 0.0  ;;  %v1720_v36 = vmax.f32 %v1583_v9, 0.0  ;;  %v1472_v7 = vpop.f32.mrb[19].mxu0  ;;  %v1585_v14 = vpop.f32.mrb[19].mxu1  ;;  %vm1785_vm9 = vcmp.lt.s32.totalorder %v1781_v63, %v1784_v6 }
 0x194   : > { %v1719_v13 = vmax.f32 %v1472_v7, 0.0  ;;  %v1721_v20 = vmax.f32 %v1585_v14, 0.0  ;;  %vm3406_vm10 = vmand %vm3399_vm8, %vm1785_vm9 }
 0x195   : > { %v1762_v12 = vpack.c.bf16 %v1718_v1, %v1714_v23  ;;  %v1764_v4 = vpack.c.bf16 %v1720_v36, %v1716_v0  ;;  %vm2450_vm11 = vmpackc.low %vm3406_vm10, %vm3406_vm10 }
 0x196   : > { %v1763_v27 = vpack.c.bf16 %v1719_v13, %v1715_v26  ;;  %v1765_v29 = vpack.c.bf16 %v1721_v20, %v1717_v18 }
 0x198   : > { %v1476_v15 = vpop.f32.mrb[20].mxu0  ;;  %v1589_v31 = vpop.f32.mrb[20].mxu1  ;;  %1797 = vmatprep.subr.bf16.mxu0 %v1763_v27  ;;  %1838 = vmatprep.subr.bf16.mxu1 %v1765_v29 }
 0x199   : > { %v1478_v51 = vpop.f32.mrb[21].mxu0  ;;  %v1591_v32 = vpop.f32.mrb[21].mxu1  ;;  %1798 = vmatpush1.bf16.msra.mxu0 %v1762_v12  ;;  %1839 = vmatpush1.bf16.msra.mxu1 %v1764_v4  ;;  %v1722_v49 = vmax.f32 %v1476_v15, 0.0  ;;  %v1724_v5 = vmax.f32 %v1589_v31, 0.0 }
 0x19a   : > { %v1480_v39 = vpop.f32.mrb[22].mxu0  ;;  %v1593_v24 = vpop.f32.mrb[22].mxu1  ;;  %v1723_v19 = vmax.f32 %v1478_v51, 0.0  ;;  %v1725_v8 = vmax.f32 %v1591_v32, 0.0  ;;  %v2747_v32 = vld [vmem:[%s3522_s2 + $0x40] sm:$0xff]  }
 0x19b   : > { %v1726_v55 = vmax.f32 %v1480_v39, 0.0  ;;  %v1728_v40 = vmax.f32 %v1593_v24, 0.0  ;;  %v1482_v61 = vpop.f32.mrb[23].mxu0  ;;  %v1595_v28 = vpop.f32.mrb[23].mxu1  ;;  %v2749_v39 = vld [vmem:[%s3522_s2 + $0xc0] sm:$0xff]  }
 0x19c   : > { %v1727_v37 = vmax.f32 %v1482_v61, 0.0  ;;  %v1729_v25 = vmax.f32 %v1595_v28, 0.0  ;;  %v2748_v24 = vld [vmem:[%s3522_s2] sm:$0xff]   ;;  %v2754_v61 = vld [vmem:[%s3522_s2 + $0x88] sm:$0xff]   ;;  %v2755_v28 = vld [vmem:[%s3522_s2 + $0x50] sm:$0xff]  }
 0x19d   : > { %v1766_v35 = vpack.c.bf16 %v1726_v55, %v1722_v49  ;;  %v1768_v34 = vpack.c.bf16 %v1728_v40, %v1724_v5  ;;  %v2751_v49 = vld [vmem:[%s3522_s2 + $0x48] sm:$0xff]   ;;  %v2792_v55 = vmov 1.0|1.0  }
 0x19e   : > { %v1767_v43 = vpack.c.bf16 %v1727_v37, %v1723_v19  ;;  %v1769_v44 = vpack.c.bf16 %v1729_v25, %v1725_v8  ;;  %v2753_v5 = vld [vmem:[%s3522_s2 + $0xc8] sm:$0xff]   ;;  %v2757_v19 = vld [vmem:[%s3522_s2 + $0xd0] sm:$0xff]   ;;  %v2759_v25 = vld [vmem:[%s3522_s2 + $0x58] sm:$0xff]  }
 0x19f   : > { %v2752_v40 = vld [vmem:[%s3522_s2 + $0x8] sm:$0xff]   ;;  %v2756_v8 = vld [vmem:[%s3522_s2 + $0x10] sm:$0xff]  }
 0x1a0   : > { %v1486_v59 = vpop.f32.mrb[24].mxu0  ;;  %v1599_v48 = vpop.f32.mrb[24].mxu1  ;;  %1799 = vmatprep.subr.bf16.mxu0 %v1767_v43  ;;  %1840 = vmatprep.subr.bf16.mxu1 %v1769_v44  ;;  %v2758_v37 = vld [vmem:[%s3522_s2 + $0x90] sm:$0xff]   ;;  %v2762_v43 = vld [vmem:[%s3522_s2 + $0x98] sm:$0xff]   ;;  %v2763_v44 = vld [vmem:[%s3522_s2 + $0x60] sm:$0xff]  }
 0x1a1   : > { %v1488_v53 = vpop.f32.mrb[25].mxu0  ;;  %v1601_v16 = vpop.f32.mrb[25].mxu1  ;;  %1800 = vmatpush1.bf16.msra.mxu0 %v1766_v35  ;;  %1841 = vmatpush1.bf16.msra.mxu1 %v1768_v34  ;;  %v1730_v21 = vmax.f32 %v1486_v59, 0.0  ;;  %v1732_v45 = vmax.f32 %v1599_v48, 0.0  ;;  %v2761_v35 = vld [vmem:[%s3522_s2 + $0xd8] sm:$0xff]   ;;  %v2764_v59 = vld [vmem:[%s3522_s2 + $0x20] sm:$0xff]  }
 0x1a2   : > { %v1490_v17 = vpop.f32.mrb[26].mxu0  ;;  %v1603_v58 = vpop.f32.mrb[26].mxu1  ;;  %v1731_v38 = vmax.f32 %v1488_v53, 0.0  ;;  %v1733_v47 = vmax.f32 %v1601_v16, 0.0  ;;  %v2760_v34 = vld [vmem:[%s3522_s2 + $0x18] sm:$0xff]   ;;  %v2766_v48 = vld [vmem:[%s3522_s2 + $0xa0] sm:$0xff]  }
 0x1a3   : > { %v1734_v52 = vmax.f32 %v1490_v17, 0.0  ;;  %v1736_v56 = vmax.f32 %v1603_v58, 0.0  ;;  %v1492_v57 = vpop.f32.mrb[27].mxu0  ;;  %v1605_v3 = vpop.f32.mrb[27].mxu1  ;;  %v2767_v53 = vld [vmem:[%s3522_s2 + $0x68] sm:$0xff]  }
 0x1a4   : > { %v1735_v54 = vmax.f32 %v1492_v57, 0.0  ;;  %v1737_v30 = vmax.f32 %v1605_v3, 0.0  ;;  %v2769_v16 = vld [vmem:[%s3522_s2 + $0xe8] sm:$0xff]   ;;  %v2777_v57 = vld [vmem:[%s3522_s2 + $0xf8] sm:$0xff]  }
 0x1a5   : > { %v1770_v33 = vpack.c.bf16 %v1734_v52, %v1730_v21  ;;  %v1772_v41 = vpack.c.bf16 %v1736_v56, %v1732_v45  ;;  %v2768_v17 = vld [vmem:[%s3522_s2 + $0x28] sm:$0xff]   ;;  %v2773_v21 = vld [vmem:[%s3522_s2 + $0xf0] sm:$0xff]   ;;  %v2775_v56 = vld [vmem:[%s3522_s2 + $0x78] sm:$0xff]  }
 0x1a6   : > { %v1771_v60 = vpack.c.bf16 %v1735_v54, %v1731_v38  ;;  %v1773_v62 = vpack.c.bf16 %v1737_v30, %v1733_v47  ;;  %v2770_v58 = vld [vmem:[%s3522_s2 + $0xa8] sm:$0xff]   ;;  %v2772_v45 = vld [vmem:[%s3522_s2 + $0x30] sm:$0xff]   ;;  %v2776_v3 = vld [vmem:[%s3522_s2 + $0x38] sm:$0xff]  }
 0x1a7   : > { %v2774_v52 = vld [vmem:[%s3522_s2 + $0xb0] sm:$0xff]   ;;  %v2778_v38 = vld [vmem:[%s3522_s2 + $0xb8] sm:$0xff]  }
 0x1a8   : > { %v1496_v10 = vpop.f32.mrb[28].mxu0  ;;  %v1609_v11 = vpop.f32.mrb[28].mxu1  ;;  %1801 = vmatprep.subr.bf16.mxu0 %v1771_v60  ;;  %1842 = vmatprep.subr.bf16.mxu1 %v1773_v62 }
 0x1a9   : > { %v1498_v2 = vpop.f32.mrb[29].mxu0  ;;  %v1611_v22 = vpop.f32.mrb[29].mxu1  ;;  %1802 = vmatpush1.bf16.msra.mxu0 %v1770_v33  ;;  %1843 = vmatpush1.bf16.msra.mxu1 %v1772_v41  ;;  %v1738_v1 = vmax.f32 %v1496_v10, 0.0  ;;  %v1740_v36 = vmax.f32 %v1609_v11, 0.0 }
 0x1aa   : > { %v1500_v9 = vpop.f32.mrb[30].mxu0  ;;  %v1613_v23 = vpop.f32.mrb[30].mxu1  ;;  %v1739_v13 = vmax.f32 %v1498_v2, 0.0  ;;  %v1741_v20 = vmax.f32 %v1611_v22, 0.0 }
 0x1ab   : > { %v1742_v7 = vmax.f32 %v1500_v9, 0.0  ;;  %v1744_v14 = vmax.f32 %v1613_v23, 0.0  ;;  %v1502_v26 = vpop.f32.mrb[31].mxu0  ;;  %v1615_v18 = vpop.f32.mrb[31].mxu1  ;;  %v2454_v23 = vld [vmem:[%s3523_s3] ss:$0 sm:$0xff] }
 0x1ac   : > { %v1743_v12 = vmax.f32 %v1502_v26, 0.0  ;;  %v1745_v4 = vmax.f32 %v1615_v18, 0.0 }
 0x1ad   : > { %v1774_v27 = vpack.c.bf16 %v1742_v7, %v1738_v1  ;;  %v1776_v29 = vpack.c.bf16 %v1744_v14, %v1740_v36 }
 0x1ae   : > { %v1775_v15 = vpack.c.bf16 %v1743_v12, %v1739_v13  ;;  %v1777_v31 = vpack.c.bf16 %v1745_v4, %v1741_v20 }
 0x1b0   : > { %1803 = vmatprep.subr.bf16.mxu0 %v1775_v15  ;;  %1844 = vmatprep.subr.bf16.mxu1 %v1777_v31 }
 0x1b1   : > { %1804 = vmatpush1.bf16.msra.mxu0 %v1774_v27  ;;  %1845 = vmatpush1.bf16.msra.mxu1 %v1776_v29 }
 0x1b2   : > { %2490 = vmatprep.subr.bf16.mxu0 %v2747_v32  ;;  %2512 = vmatprep.subr.bf16.mxu1 %v2749_v39 }
 0x1b4   : > { %2451 = vmatmul.mubr.msk.bf16.vlgmr.msra.gmra.mrb[32].mxu0 %vm2450_vm11, %v2792_v55  ;;  %2453 = vmatmul.mubr.msk.bf16.vlgmr.msra.gmra.mrb[32].mxu1 %vm2450_vm11, %v2792_v55 }
 0x1b5   : > { %2491 = vmatpush3.bf16.msra.mxu0 %v2748_v24  ;;  %2513 = vmatpush3.bf16.msra.mxu1 %v2750_v42 }
 0x1b6   : > { %2492 = vmatprep.subr.bf16.mxu0 %v2751_v49  ;;  %2514 = vmatprep.subr.bf16.mxu1 %v2753_v5 }
 0x1b9   : > { %2493 = vmatpush3.bf16.msra.mxu0 %v2752_v40  ;;  %2515 = vmatpush3.bf16.msra.mxu1 %v2754_v61 }
 0x1ba   : > { %2494 = vmatprep.subr.bf16.mxu0 %v2755_v28  ;;  %2516 = vmatprep.subr.bf16.mxu1 %v2757_v19 }
 0x1bd   : > { %2495 = vmatpush3.bf16.msra.mxu0 %v2756_v8  ;;  %2517 = vmatpush3.bf16.msra.mxu1 %v2758_v37 }
 0x1be   : > { %2496 = vmatprep.subr.bf16.mxu0 %v2759_v25  ;;  %2518 = vmatprep.subr.bf16.mxu1 %v2761_v35 }
 0x1c1   : > { %2497 = vmatpush3.bf16.msra.mxu0 %v2760_v34  ;;  %2519 = vmatpush3.bf16.msra.mxu1 %v2762_v43 }
 0x1c2   : > { %2498 = vmatprep.subr.bf16.mxu0 %v2763_v44  ;;  %2520 = vmatprep.subr.bf16.mxu1 %v2765_v46 }
 0x1c5   : > { %2499 = vmatpush3.bf16.msra.mxu0 %v2764_v59  ;;  %2521 = vmatpush3.bf16.msra.mxu1 %v2766_v48 }
 0x1c6   : > { %2500 = vmatprep.subr.bf16.mxu0 %v2767_v53  ;;  %2522 = vmatprep.subr.bf16.mxu1 %v2769_v16 }
 0x1c9   : > { %2501 = vmatpush3.bf16.msra.mxu0 %v2768_v17  ;;  %2523 = vmatpush3.bf16.msra.mxu1 %v2770_v58 }
 0x1ca   : > { %2502 = vmatprep.subr.bf16.mxu0 %v2771_v50  ;;  %2524 = vmatprep.subr.bf16.mxu1 %v2773_v21 }
 0x1cd   : > { %2503 = vmatpush3.bf16.msra.mxu0 %v2772_v45  ;;  %2525 = vmatpush3.bf16.msra.mxu1 %v2774_v52 }
 0x1ce   : > { %2504 = vmatprep.subr.bf16.mxu0 %v2775_v56  ;;  %2526 = vmatprep.subr.bf16.mxu1 %v2777_v57 }
 0x1d1   : > { %2505 = vmatpush3.bf16.msra.mxu0 %v2776_v3  ;;  %2527 = vmatpush3.bf16.msra.mxu1 %v2778_v38 }
 0x287   : > { %v1823_v47 = vpop.f32.mrb[32].mxu0  ;;  %v1864_v54 = vpop.f32.mrb[32].mxu1 }
 0x288   : > { %v1825_v30 = vpop.f32.mrb[33].mxu0  ;;  %v1873_v33 = vpack.c.bf16 %v1864_v54, %v1864_v54  ;;  %v1866_v41 = vpop.f32.mrb[33].mxu1  ;;  %v1871_v10 = vpack.c.bf16 %v1823_v47, %v1823_v47 }
 0x289   : > { %v1872_v60 = vpack.c.bf16 %v1825_v30, %v1825_v30  ;;  %v1874_v62 = vpack.c.bf16 %v1866_v41, %v1866_v41  ;;  %v1827_v63 = vpop.f32.mrb[34].mxu0  ;;  %v1868_v6 = vpop.f32.mrb[34].mxu1 }
 0x28a   : > { %v1828_v11 = vpop.f32.mrb[35].mxu0  ;;  %v1869_v2 = vpop.f32.mrb[35].mxu1 }
 0x28b   : > { %2170 = vmatprep.mubr.bf16.mxu0 %v1872_v60  ;;  %2210 = vmatprep.mubr.bf16.mxu1 %v1874_v62 }
 0x28c   : > { %2171 = vmatmul.mubr.bf16.vlgmr.msra.gmra.mrb[36].mxu0 %v1871_v10  ;;  %2211 = vmatmul.mubr.bf16.vlgmr.msra.gmra.mrb[36].mxu1 %v1873_v33 }
 0x35f   : > { %v2506_v22 = vpop.f32.mrb[36].mxu0  ;;  %v2528_v9 = vpop.f32.mrb[36].mxu1 }
 0x360   : > { %v2507_v0 = vpop.f32.mrb[37].mxu0  ;;  %v2529_v1 = vpop.f32.mrb[37].mxu1 }
 0x361   : > { %v2508_v36 = vadd.f32 %v2507_v0, %v2506_v22  ;;  %v2509_v7 = vpop.f32.mrb[38].mxu0  ;;  %v2530_v14 = vadd.f32 %v2529_v1, %v2528_v9  ;;  %v2531_v26 = vpop.f32.mrb[38].mxu1 }
 0x362   : > { %v2510_v18 = vpop.f32.mrb[39].mxu0  ;;  %v2532_v13 = vpop.f32.mrb[39].mxu1 }
 0x363   : > { %v2173_v20 = vadd.f32 %v2508_v36, %v2454_v23 }
 0x365   : > { %v2213_v12 = vadd.f32 %v2530_v14, %v2173_v20 }
 0x367   : > { %v2218_v4 = vmax.f32 %v2213_v12, 0.0 }
 0x369   : > { %v2487_v27 = vmul.f32 -1.442695, %v2218_v4 }
 0x36b   : > { %2779 = vpow2.f32 %v2487_v27 }
 0x375   : > { %v2780_v29 = vpop.eup %2779 }
 0x376   : > { %v2222_v15 = vadd.f32 1.0, %v2780_v29 }
 0x378   : > { %2781 = vrcp.f32 %v2222_v15 }
 0x382   : > { %v2782_v31 = vpop.eup %2781 }
 0x383   : > { %2226 = vst.msk [vmem:[%s200_s6] sm:$0xff] %vm2225_vm12, %v2782_v31 }
 0x384 PF: > { %s14_s15 = sadd.s32 1, %s2789_s15  }
 0x385   : > { %p11_p5 = scmp.ge.s32.totalorder %s14_s15, 4  }
 0x387   :  { %13 = sbr.rel (!%p11_p5) target bundleno = 1 (0x1), region = 68 }

</bundles_post_ra>
